<compile_context>
chip_gen: v7x
topology: tpu7x:2x2x1
jax: 0.10.0
libtpu: 0.0.40
codegen_flags: <defaults>
</compile_context>

<pallas_src>
import numpy as np
import jax
import jax.numpy as jnp
from jax.experimental import pallas as pl
from jax.experimental.pallas import tpu as pltpu

SUBLANES = 8          # vreg sublane width (f32)
MAX_TILE_B = 4096     # batch rows per grid step (unpadded streams -> ~1 MiB/step)
_HALF_LOG_2PI = 0.5 * float(np.log(2.0 * np.pi))


def _round_up(x, m):
    return ((x + m - 1) // m) * m


def _cdiv(a, b):
    return (a + b - 1) // b


# ------------------------------------------------------------------ kernel ---
def actor_kernel(states_ref, act_ref,
                 w1_ref, b1_ref, w2_ref, b2_ref, w3_ref, b3_ref,
                 inv_std_ref, logp_const_ref,
                 mu_ref, logp_ref):
    x = states_ref[...]                                               # (TB, S)

    # mu_net: Linear -> Tanh -> Linear -> Tanh -> Linear
    h = jnp.tanh(jnp.dot(x, w1_ref[...],
                         preferred_element_type=jnp.float32) + b1_ref[...])
    h = jnp.tanh(jnp.dot(h, w2_ref[...],
                         preferred_element_type=jnp.float32) + b2_ref[...])
    mu = jnp.dot(h, w3_ref[...],
                 preferred_element_type=jnp.float32) + b3_ref[...]    # (TB, A)
    mu_ref[...] = mu

    # Normal(mu, std).log_prob(act).sum(-1, keepdims=True)
    z = (act_ref[...] - mu) * inv_std_ref[...]
    logp_el = -0.5 * z * z + logp_const_ref[...]                      # (TB, A)
    logp_ref[...] = jnp.sum(logp_el, axis=-1, keepdims=True)          # (TB, 1)


# ----------------------------------------------------------------- wrapper ---
@jax.jit
def actor_forward(states, act, params):
    """Returns (mu, std, logp_a) — (mu, std) parameterize the Normal pi."""
    w1, b1, w2, b2, w3, b3, log_std = params
    batch, state_size = states.shape
    hidden = w1.shape[1]
    action_size = w3.shape[1]

    # ---- tile / grid choice ------------------------------------------------
    n_tiles = max(_cdiv(batch, MAX_TILE_B), 1)
    if batch >= 2 * SUBLANES:
        # v7x megacore: make sure the "parallel" batch axis has >=2 grid steps.
        n_tiles = max(n_tiles, 2)
    tile_b = _round_up(_cdiv(batch, n_tiles), SUBLANES)
    batch_p = _round_up(batch, tile_b)
    grid = (batch_p // tile_b,)

    # Pad ONLY the batch axis (rows) up to a multiple of tile_b; feature dims
    # stay at their natural widths (full-last-dim blocks are legal below 128).
    if batch_p != batch:
        pad_rows = batch_p - batch
        states_in = jnp.pad(states, ((0, pad_rows), (0, 0)))
        act_in = jnp.pad(act, ((0, pad_rows), (0, 0)))
    else:
        states_in = states
        act_in = act

    # Precompute the per-lane Normal log-prob pieces once.
    inv_std = jnp.exp(-log_std)                  # (1, A)
    logp_const = -log_std - _HALF_LOG_2PI        # (1, A)

    def stream_spec(cols):
        return pl.BlockSpec((tile_b, cols), lambda i: (i, 0))

    def resident_spec(shape):
        return pl.BlockSpec(shape, lambda i: (0, 0))   # stays VMEM-resident

    # ---- VMEM budget (double-buffered streams + resident weights) ----------
    stream_bytes = 2 * 4 * tile_b * (state_size + 2 * action_size + 1)
    weight_bytes = 4 * (w1.size + b1.size + w2.size + b2.size + w3.size
                        + b3.size + 2 * action_size)
    vmem_limit = int(min(max(2 * (stream_bytes + weight_bytes), 32 << 20),
                         48 << 20))

    flops = 2 * batch_p * (state_size * hidden + hidden * hidden
                           + hidden * action_size)
    bytes_accessed = 4 * batch_p * (state_size + 2 * action_size + 1) + weight_bytes

    mu_p, logp_p = pl.pallas_call(
        actor_kernel,
        out_shape=(jax.ShapeDtypeStruct((batch_p, action_size), jnp.float32),
                   jax.ShapeDtypeStruct((batch_p, 1), jnp.float32)),
        grid=grid,
        in_specs=[
            stream_spec(state_size),                               # states
            stream_spec(action_size),                              # act
            resident_spec((state_size, hidden)), resident_spec((1, hidden)),  # w1,b1
            resident_spec((hidden, hidden)),     resident_spec((1, hidden)),  # w2,b2
            resident_spec((hidden, action_size)), resident_spec((1, action_size)),  # w3,b3
            resident_spec((1, action_size)),                       # inv_std
            resident_spec((1, action_size)),                       # logp_const
        ],
        out_specs=(stream_spec(action_size), stream_spec(1)),
        compiler_params=pltpu.CompilerParams(
            dimension_semantics=("parallel",),
            vmem_limit_bytes=vmem_limit),
        cost_estimate=pl.CostEstimate(
            flops=int(flops),
            transcendentals=int(2 * batch_p * hidden),
            bytes_accessed=int(bytes_accessed)),
    )(states_in, act_in, w1, b1, w2, b2, w3, b3, inv_std, logp_const)

    mu = mu_p[:batch]
    logp = logp_p[:batch, 0]
    std = jnp.exp(log_std[0])          # (A,) — same as torch.exp(self.log_std)
    return mu, std, logp


# ----------------------------------------------------- parameter construction
def init_params(key, state_size, hidden_nodes, action_size):
    """Deterministic synthetic init mirroring the module's shapes."""
    ks = jax.random.split(key, 6)

    def lin(kw, kb, fan_in, fan_out):
        bound = 1.0 / np.sqrt(fan_in)
        w = jax.random.uniform(kw, (fan_in, fan_out), jnp.float32, -bound, bound)
        b = jax.random.uniform(kb, (1, fan_out), jnp.float32, -bound, bound)
        return w, b

    w1, b1 = lin(ks[0], ks[1], state_size, hidden_nodes)
    w2, b2 = lin(ks[2], ks[3], hidden_nodes, hidden_nodes)
    w3, b3 = lin(ks[4], ks[5], hidden_nodes, action_size)
    log_std = jnp.full((1, action_size), -0.5, dtype=jnp.float32)  # Parameter(-0.5 * ones)
    return (w1, b1, w2, b2, w3, b3, log_std)


# --------------------------------------------------------------- reference ---
def actor_reference(states, act, params):
    w1, b1, w2, b2, w3, b3, log_std = params
    h = jnp.tanh(states @ w1 + b1)
    h = jnp.tanh(h @ w2 + b2)
    mu = h @ w3 + b3
    std = jnp.exp(log_std)
    logp = (-0.5 * ((act - mu) / std) ** 2 - log_std
            - 0.5 * jnp.log(2.0 * jnp.pi)).sum(axis=-1)
    return mu, std[0], logp


if __name__ == "__main__":
    # small shapes consistent with the module
    batch = 8
    state_size = 16
    hidden_nodes = 32       # settings.ActorCritic.hidden_nodes
    action_size = 4
    # TODO(synk): settings.ActorCritic.layers assumed = 2 hidden layers (Tanh activation).

    key = jax.random.PRNGKey(0)
    k_states, k_act, k_params = jax.random.split(key, 3)

    states = jax.random.normal(k_states, (batch, state_size), jnp.float32)
    act = jax.random.normal(k_act, (batch, action_size), jnp.float32)
    params = init_params(k_params, state_size, hidden_nodes, action_size)

    mu, std, logp = actor_forward(states, act, params)
    jax.block_until_ready((mu, std, logp))

    mu_ref, std_ref, logp_ref = actor_reference(states, act, params)
    np.testing.assert_allclose(np.asarray(mu), np.asarray(mu_ref), rtol=1e-5, atol=1e-5)
    np.testing.assert_allclose(np.asarray(std), np.asarray(std_ref), rtol=1e-5, atol=1e-5)
    np.testing.assert_allclose(np.asarray(logp), np.asarray(logp_ref), rtol=1e-5, atol=1e-5)

    print("KERNEL_OK")
</pallas_src>

<mosaic_0001>
module attributes {stable_mosaic.version = 11 : i64} {
  func.func @actor_kernel(%arg0: i32, %arg1: memref<8x16xf32, #tpu.memory_space<vmem>>, %arg2: memref<8x4xf32, #tpu.memory_space<vmem>>, %arg3: memref<16x32xf32, #tpu.memory_space<vmem>>, %arg4: memref<1x32xf32, #tpu.memory_space<vmem>>, %arg5: memref<32x32xf32, #tpu.memory_space<vmem>>, %arg6: memref<1x32xf32, #tpu.memory_space<vmem>>, %arg7: memref<32x4xf32, #tpu.memory_space<vmem>>, %arg8: memref<1x4xf32, #tpu.memory_space<vmem>>, %arg9: memref<1x4xf32, #tpu.memory_space<vmem>>, %arg10: memref<1x4xf32, #tpu.memory_space<vmem>>, %arg11: memref<8x4xf32, #tpu.memory_space<vmem>>, %arg12: memref<8x1xf32, #tpu.memory_space<vmem>>) attributes {dimension_semantics = [#tpu.dimension_semantics<parallel>], iteration_bounds = array<i64: 1>, scalar_prefetch = 0 : i64, scratch_operands = 0 : i64, tpu.core_type = #tpu.core_type<tc>, window_params = [{transform_indices = @transform_0, window_bounds = array<i64: 8, 16>}, {transform_indices = @transform_1, window_bounds = array<i64: 8, 4>}, {pipeline_mode = #tpu.pipeline_mode<synchronous>, transform_indices = @transform_2, window_bounds = array<i64: 16, 32>}, {pipeline_mode = #tpu.pipeline_mode<synchronous>, transform_indices = @transform_3, window_bounds = array<i64: 1, 32>}, {pipeline_mode = #tpu.pipeline_mode<synchronous>, transform_indices = @transform_4, window_bounds = array<i64: 32, 32>}, {pipeline_mode = #tpu.pipeline_mode<synchronous>, transform_indices = @transform_5, window_bounds = array<i64: 1, 32>}, {pipeline_mode = #tpu.pipeline_mode<synchronous>, transform_indices = @transform_6, window_bounds = array<i64: 32, 4>}, {pipeline_mode = #tpu.pipeline_mode<synchronous>, transform_indices = @transform_7, window_bounds = array<i64: 1, 4>}, {pipeline_mode = #tpu.pipeline_mode<synchronous>, transform_indices = @transform_8, window_bounds = array<i64: 1, 4>}, {pipeline_mode = #tpu.pipeline_mode<synchronous>, transform_indices = @transform_9, window_bounds = array<i64: 1, 4>}, {transform_indices = @transform_10, window_bounds = array<i64: 8, 4>}, {transform_indices = @transform_11, window_bounds = array<i64: 8, 1>}]} {
    %c0 = arith.constant 0 : index
    %c0_0 = arith.constant 0 : index
    %0 = vector.load %arg1[%c0, %c0_0] : memref<8x16xf32, #tpu.memory_space<vmem>>, vector<8x16xf32>
    %c0_1 = arith.constant 0 : index
    %c0_2 = arith.constant 0 : index
    %1 = vector.load %arg3[%c0_1, %c0_2] : memref<16x32xf32, #tpu.memory_space<vmem>>, vector<16x32xf32>
    %cst = arith.constant dense<0.000000e+00> : vector<8x32xf32>
    %2 = tpu.matmul %0, %1, %cst {dimension_numbers = #tpu.dot_dimension_numbers<[1], [0], [0], [1], [0, 0, 1, 1], [], []>} : vector<8x16xf32>, vector<16x32xf32>, vector<8x32xf32> -> vector<8x32xf32>
    %c0_3 = arith.constant 0 : index
    %c0_4 = arith.constant 0 : index
    %3 = vector.load %arg4[%c0_3, %c0_4] : memref<1x32xf32, #tpu.memory_space<vmem>>, vector<1x32xf32>
    %4 = vector.broadcast %3 : vector<1x32xf32> to vector<8x32xf32>
    %5 = arith.addf %2, %4 : vector<8x32xf32>
    %6 = math.tanh %5 : vector<8x32xf32>
    %c0_5 = arith.constant 0 : index
    %c0_6 = arith.constant 0 : index
    %7 = vector.load %arg5[%c0_5, %c0_6] : memref<32x32xf32, #tpu.memory_space<vmem>>, vector<32x32xf32>
    %cst_7 = arith.constant dense<0.000000e+00> : vector<8x32xf32>
    %8 = tpu.matmul %6, %7, %cst_7 {dimension_numbers = #tpu.dot_dimension_numbers<[1], [0], [0], [1], [0, 0, 1, 1], [], []>} : vector<8x32xf32>, vector<32x32xf32>, vector<8x32xf32> -> vector<8x32xf32>
    %c0_8 = arith.constant 0 : index
    %c0_9 = arith.constant 0 : index
    %9 = vector.load %arg6[%c0_8, %c0_9] : memref<1x32xf32, #tpu.memory_space<vmem>>, vector<1x32xf32>
    %10 = vector.broadcast %9 : vector<1x32xf32> to vector<8x32xf32>
    %11 = arith.addf %8, %10 : vector<8x32xf32>
    %12 = math.tanh %11 : vector<8x32xf32>
    %c0_10 = arith.constant 0 : index
    %c0_11 = arith.constant 0 : index
    %13 = vector.load %arg7[%c0_10, %c0_11] : memref<32x4xf32, #tpu.memory_space<vmem>>, vector<32x4xf32>
    %cst_12 = arith.constant dense<0.000000e+00> : vector<8x4xf32>
    %14 = tpu.matmul %12, %13, %cst_12 {dimension_numbers = #tpu.dot_dimension_numbers<[1], [0], [0], [1], [0, 0, 1, 1], [], []>} : vector<8x32xf32>, vector<32x4xf32>, vector<8x4xf32> -> vector<8x4xf32>
    %c0_13 = arith.constant 0 : index
    %c0_14 = arith.constant 0 : index
    %15 = vector.load %arg8[%c0_13, %c0_14] : memref<1x4xf32, #tpu.memory_space<vmem>>, vector<1x4xf32>
    %16 = vector.broadcast %15 : vector<1x4xf32> to vector<8x4xf32>
    %17 = arith.addf %14, %16 : vector<8x4xf32>
    %c0_15 = arith.constant 0 : index
    %c0_16 = arith.constant 0 : index
    %18 = vector.load %arg11[%c0_15, %c0_16] : memref<8x4xf32, #tpu.memory_space<vmem>>, vector<8x4xf32>
    tpu.vector_store %arg11[%c0_15, %c0_16], %17 {strides = array<i32>} : memref<8x4xf32, #tpu.memory_space<vmem>>, vector<8x4xf32>,
    %c0_17 = arith.constant 0 : index
    %c0_18 = arith.constant 0 : index
    %19 = vector.load %arg2[%c0_17, %c0_18] : memref<8x4xf32, #tpu.memory_space<vmem>>, vector<8x4xf32>
    %20 = arith.subf %19, %17 : vector<8x4xf32>
    %c0_19 = arith.constant 0 : index
    %c0_20 = arith.constant 0 : index
    %21 = vector.load %arg9[%c0_19, %c0_20] : memref<1x4xf32, #tpu.memory_space<vmem>>, vector<1x4xf32>
    %22 = vector.broadcast %21 : vector<1x4xf32> to vector<8x4xf32>
    %23 = arith.mulf %20, %22 : vector<8x4xf32>
    %cst_21 = arith.constant -5.000000e-01 : f32
    %24 = vector.broadcast %cst_21 : f32 to vector<8x4xf32>
    %25 = arith.mulf %24, %23 : vector<8x4xf32>
    %26 = arith.mulf %25, %23 : vector<8x4xf32>
    %c0_22 = arith.constant 0 : index
    %c0_23 = arith.constant 0 : index
    %27 = vector.load %arg10[%c0_22, %c0_23] : memref<1x4xf32, #tpu.memory_space<vmem>>, vector<1x4xf32>
    %28 = vector.broadcast %27 : vector<1x4xf32> to vector<8x4xf32>
    %29 = arith.addf %26, %28 : vector<8x4xf32>
    %cst_24 = arith.constant dense<0.000000e+00> : vector<8xf32>
    %30 = vector.multi_reduction <add>, %29, %cst_24 [1] : vector<8x4xf32> to vector<8xf32>
    %31 = vector.shape_cast %30 : vector<8xf32> to vector<8x1xf32>
    %c0_25 = arith.constant 0 : index
    %c0_26 = arith.constant 0 : index
    %32 = vector.load %arg12[%c0_25, %c0_26] : memref<8x1xf32, #tpu.memory_space<vmem>>, vector<8x1xf32>
    tpu.vector_store %arg12[%c0_25, %c0_26], %31 {strides = array<i32>} : memref<8x1xf32, #tpu.memory_space<vmem>>, vector<8x1xf32>,
    return
  }
  func.func @transform_0(%arg0: i32) -> (i32, i32) {
    %c0_i32 = arith.constant 0 : i32
    %c0_i32_0 = arith.constant 0 : i32
    return %arg0, %c0_i32 : i32, i32
  }
  func.func @transform_1(%arg0: i32) -> (i32, i32) {
    %c0_i32 = arith.constant 0 : i32
    %c0_i32_0 = arith.constant 0 : i32
    return %arg0, %c0_i32 : i32, i32
  }
  func.func @transform_2(%arg0: i32) -> (i32, i32) {
    %c0_i32 = arith.constant 0 : i32
    %c0_i32_0 = arith.constant 0 : i32
    %c0_i32_1 = arith.constant 0 : i32
    return %c0_i32, %c0_i32_0 : i32, i32
  }
  func.func @transform_3(%arg0: i32) -> (i32, i32) {
    %c0_i32 = arith.constant 0 : i32
    %c0_i32_0 = arith.constant 0 : i32
    %c0_i32_1 = arith.constant 0 : i32
    return %c0_i32, %c0_i32_0 : i32, i32
  }
  func.func @transform_4(%arg0: i32) -> (i32, i32) {
    %c0_i32 = arith.constant 0 : i32
    %c0_i32_0 = arith.constant 0 : i32
    %c0_i32_1 = arith.constant 0 : i32
    return %c0_i32, %c0_i32_0 : i32, i32
  }
  func.func @transform_5(%arg0: i32) -> (i32, i32) {
    %c0_i32 = arith.constant 0 : i32
    %c0_i32_0 = arith.constant 0 : i32
    %c0_i32_1 = arith.constant 0 : i32
    return %c0_i32, %c0_i32_0 : i32, i32
  }
  func.func @transform_6(%arg0: i32) -> (i32, i32) {
    %c0_i32 = arith.constant 0 : i32
    %c0_i32_0 = arith.constant 0 : i32
    %c0_i32_1 = arith.constant 0 : i32
    return %c0_i32, %c0_i32_0 : i32, i32
  }
  func.func @transform_7(%arg0: i32) -> (i32, i32) {
    %c0_i32 = arith.constant 0 : i32
    %c0_i32_0 = arith.constant 0 : i32
    %c0_i32_1 = arith.constant 0 : i32
    return %c0_i32, %c0_i32_0 : i32, i32
  }
  func.func @transform_8(%arg0: i32) -> (i32, i32) {
    %c0_i32 = arith.constant 0 : i32
    %c0_i32_0 = arith.constant 0 : i32
    %c0_i32_1 = arith.constant 0 : i32
    return %c0_i32, %c0_i32_0 : i32, i32
  }
  func.func @transform_9(%arg0: i32) -> (i32, i32) {
    %c0_i32 = arith.constant 0 : i32
    %c0_i32_0 = arith.constant 0 : i32
    %c0_i32_1 = arith.constant 0 : i32
    return %c0_i32, %c0_i32_0 : i32, i32
  }
  func.func @transform_10(%arg0: i32) -> (i32, i32) {
    %c0_i32 = arith.constant 0 : i32
    %c0_i32_0 = arith.constant 0 : i32
    return %arg0, %c0_i32 : i32, i32
  }
  func.func @transform_11(%arg0: i32) -> (i32, i32) {
    %c0_i32 = arith.constant 0 : i32
    %c0_i32_0 = arith.constant 0 : i32
    return %arg0, %c0_i32 : i32, i32
  }
}

</mosaic_0001>

<bundles_post_ra>
// kernel: actor_forward.1
= control target key start
LH: loop header
LB: loop body
LE: loop exit
PB: predicated region body
PF: predicated region fallthrough
CT: control target
= control target key end

     0   :  { %v399_v0 = vmov 0.0|0.0   ;;  %vm400_vm0 = vmmov 0   ;;  %v401_v3 = vmov 0.0   ;;  %vm47_vm1 = vcmask 130048   ;;  %s521_s2 = inlined_call_operand.vmem [shape: f32[16,32], index: 2, kind: input, shape index: {}]   ;;  %s522_s0 = inlined_call_operand.vmem [shape: f32[8,16], index: 0, kind: input, shape index: {}]   ;;  %s523_s4 = inlined_call_operand.vmem [shape: f32[32,32], index: 4, kind: input, shape index: {}]   ;;  %s524_s3 = inlined_call_operand.vmem [shape: f32[1,32], index: 3, kind: input, shape index: {}]   ;;  %s525_s6 = inlined_call_operand.vmem [shape: f32[32,4], index: 6, kind: input, shape index: {}]   ;;  %s526_s5 = inlined_call_operand.vmem [shape: f32[1,32], index: 5, kind: input, shape index: {}]   ;;  %s527_s7 = inlined_call_operand.vmem [shape: f32[1,4], index: 7, kind: input, shape index: {}]   ;;  %s528_s1 = inlined_call_operand.vmem [shape: f32[8,4], index: 1, kind: input, shape index: {}]   ;;  %s529_s8 = inlined_call_operand.vmem [shape: f32[1,4], index: 8, kind: input, shape index: {}]   ;;  %s530_s10 = inlined_call_operand.vmem [shape: f32[8,4], index: 10, kind: output, shape index: {0}]   ;;  %s531_s9 = inlined_call_operand.vmem [shape: f32[1,4], index: 9, kind: input, shape index: {}]   ;;  %s532_s11 = inlined_call_operand.vmem [shape: f32[8,1], index: 11, kind: output, shape index: {1}]  }
   0x1   :  { %377 = vmatprep.subr.bf16.mxu0 %v399_v0  ;;  %v38_v1 = vld [vmem:[%s521_s2] sm:$0xff]  ;;  %v39_v2 = vld [vmem:[%s521_s2 + $0x8] sm:$0xff]  ;;  %352 = vmatprep.mubr.msk.f32.mxu0 %vm400_vm0, %v401_v3  ;;  %v124_v8 = vld [vmem:[%s523_s4 + $0x10] sm:$0xff]  ;;  %vm133_vm2 = vcmask 261120   ;;  %vm292_vm3 = vcmask 31744   ;;  %vm317_vm4 = vcmask 7168  }
   0x2   :  { %v378_v4 = vpack.c.bf16 %v39_v2, %v38_v1  ;;  %380 = vmatprep.subr.bf16.mxu1 %v399_v0  ;;  %363 = vmatprep.mubr.msk.f32.mxu1 %vm400_vm0, %v401_v3  ;;  %v37_v5 = vld [vmem:[%s522_s0] sm:$0xff]  ;;  %v123_v7 = vld [vmem:[%s523_s4 + $0x8] sm:$0xff]  ;;  %v125_v10 = vld [vmem:[%s523_s4 + $0x18] sm:$0xff] }
   0x3   :  { %v122_v6 = vld [vmem:[%s523_s4] sm:$0xff]  ;;  %v384_v11 = vpack.c.bf16 %v125_v10, %v124_v8  ;;  %v209_v18 = vld [vmem:[%s525_s6 + $0x8] sm:$0xff]  ;;  %v210_v19 = vld [vmem:[%s525_s6 + $0x10] sm:$0xff] }
   0x4   :  { %379 = vmatpush3.bf16.msra.mxu0 %v378_v4  ;;  %v381_v9 = vpack.c.bf16 %v123_v7, %v122_v6  ;;  %v327_v12 = vld [vmem:[%s524_s3] ss:$0 sm:$0xff]  ;;  %v211_v21 = vld [vmem:[%s525_s6 + $0x18] sm:$0xff] }
   0x5   :  { %386 = vmatprep.subr.bf16.mxu0 %v399_v0  ;;  %v208_v17 = vld [vmem:[%s525_s6] sm:$0xff]  ;;  %v390_v22 = vpack.c.bf16 %v211_v21, %v210_v19 }
   0x6   :  { %382 = vmatpush3.bf16.msra.mxu1 %v381_v9  ;;  %v387_v20 = vpack.c.bf16 %v209_v18, %v208_v17  ;;  %v329_v23 = vld [vmem:[%s526_s5] ss:$0 sm:$0xff] }
   0x7   :  { %353 = vmatmul.mubr.msk.f32.vlgmr.msra.gmra.mrb[0].mxu0 %vm47_vm1, %v37_v5  ;;  %383 = vmatprep.subr.bf16.mxu1 %v399_v0  ;;  %v331_v28 = vld [vmem:[%s527_s7] ss:$0 sm:$0xff] }
   0x8   :  { %374 = vmatprep.mubr.msk.f32.mxu0 %vm400_vm0, %v401_v3  ;;  %388 = vmatpush3.bf16.msra.mxu0 %v387_v20  ;;  %v294_v30 = vld [vmem:[%s528_s1] sm:$0xff] }
   0x9   :  { %389 = vmatprep.subr.bf16.mxu0 %v399_v0  ;;  %v333_v33 = vld [vmem:[%s529_s8] ss:$0 sm:$0xff] }
   0xa   :  { %385 = vmatpush3.bf16.msra.mxu1 %v384_v11  ;;  %v334_v37 = vld [vmem:[%s531_s9] ss:$0 sm:$0xff] }
   0xc   :  { %391 = vmatpush3.bf16.msra.mxu0 %v390_v22 }
  0xda   :  { %v117_v13 = vpop.f32.mrb[0].mxu0 }
  0xdb   :  { %v118_v14 = vadd.f32 %v327_v12, %v117_v13  ;;  %v354_v15 = vpop.f32.mrb[1].mxu0 }
  0xdd   :  { %395 = vtanh.f32 %v118_v14 }
  0xe7   :  { %v396_v16 = vpop.eup %395 }
  0xe8   :  { %364 = vmatmul.mubr.msk.f32.vlgmr.msra.gmra.mrb[0].mxu1 %vm133_vm2, %v396_v16 }
 0x1bb   :  { %v203_v24 = vpop.f32.mrb[0].mxu1 }
 0x1bc   :  { %v204_v25 = vadd.f32 %v329_v23, %v203_v24  ;;  %v365_v26 = vpop.f32.mrb[1].mxu1 }
 0x1be   :  { %397 = vtanh.f32 %v204_v25 }
 0x1c8   :  { %v398_v27 = vpop.eup %397 }
 0x1c9   :  { %375 = vmatmul.mubr.msk.f32.vlgmr.msra.gmra.mrb[2].mxu0 %vm133_vm2, %v398_v27 }
 0x29c   :  { %v288_v29 = vpop.f32.mrb[2].mxu0 }
 0x29d   :  { %v289_v31 = vadd.f32 %v331_v28, %v288_v29  ;;  %v376_v32 = vpop.f32.mrb[3].mxu0 }
 0x29f   :  { %v295_v34 = vsub.f32 %v294_v30, %v289_v31  ;;  %293 = vst.msk [vmem:[%s530_s10] sm:$0xff] %vm292_vm3, %v289_v31 }
 0x2a1   :  { %v303_v35 = vmul.f32 %v333_v33, %v295_v34 }
 0x2a3   :  { %v304_v36 = vmul.f32 -0.5, %v303_v35 }
 0x2a5   :  { %v305_v38 = vmul.f32 %v304_v36, %v303_v35 }
 0x2a7   :  { %v313_v39 = vadd.f32 %v334_v37, %v305_v38 }
 0x2a9   :  { %v314_v40 = vsel %vm292_vm3, %v313_v39, 0.0 }
 0x2aa   :  { %315 = vadd.xlane.f32.xlu0 %v314_v40 }
 0x337   :  { %v316_v41 = vpop.xlane.xlu0 %315 }
 0x338   :  { %318 = vst.msk [vmem:[%s532_s11] sm:$0xff] %vm317_vm4, %v316_v41 }

</bundles_post_ra>
